<compile_context>
chip_gen: v7x
topology: tpu7x:2x2x1
jax: 0.10.0
libtpu: 0.0.40
codegen_flags: <defaults>
</compile_context>

<pallas_src>
import functools

import jax
import jax.numpy as jnp
from jax.experimental import pallas as pl
from jax.experimental.pallas import tpu as pltpu


def _merged_boundary_kernel(x_ref, d_ref, loss_ref, *, scale):
    # x_ref : VMEM (4B, W) native dtype  -- [top, bottom, left, right] lines packed on sublanes
    # d_ref : VMEM (4B, W) f32           -- matching domain lines, pre-scaled by data_norm
    # loss_ref: SMEM (1, 1) f32
    diff = x_ref[...].astype(jnp.float32) - d_ref[...]
    loss_ref[0, 0] = jnp.sum(diff * diff) * scale


def _split_boundary_kernel(rows_ref, cols_ref, drows_ref, dcols_ref, loss_ref,
                           *, w_inv_norm2, inv_bw, inv_bh):
    # rows_ref : VMEM (2B, W) native dtype   drows_ref : VMEM (2B, W) f32 (pre-scaled)
    # cols_ref : VMEM (2B, H) native dtype   dcols_ref : VMEM (2B, H) f32 (pre-scaled)
    # loss_ref : SMEM (1, 1) f32
    dr = rows_ref[...].astype(jnp.float32) - drows_ref[...]
    dc = cols_ref[...].astype(jnp.float32) - dcols_ref[...]
    total = jnp.sum(dr * dr) * inv_bw + jnp.sum(dc * dc) * inv_bh
    loss_ref[0, 0] = total * w_inv_norm2


def make_domain(xmin, xmax, ymin, ymax, nnx, nny):
    """domain[i, j] = x[i]**3 + y[j]**3  (torch.meshgrid 'ij' semantics)."""
    x = jnp.linspace(xmin, xmax, nnx, dtype=jnp.float32)
    y = jnp.linspace(ymin, ymax, nny, dtype=jnp.float32)
    X, Y = jnp.meshgrid(x, y, indexing="ij")
    return X ** 3 + Y ** 3  # (nnx, nny)


def dirichlet_boundary_loss(output, domain, bound_weight, data_norm=1.0):
    """output: (B, C, H, W) any float dtype, domain: (H, W) -> scalar f32 loss."""
    B, C, H, W = output.shape
    assert domain.shape == (H, W)
    assert H >= 2 and W >= 2
    data_norm = float(data_norm)
    weight = float(bound_weight)
    inv_norm2 = 1.0 / (data_norm * data_norm)

    # Sublane-dense 2-D boundary slabs of channel 0, in the network's native
    # dtype (cast happens in-kernel on the tiny slabs only).
    #   rows: (2B, W) packed per-batch as [top, bottom]
    #   cols: (2B, H) packed per-batch as [left, right]
    rows = output[:, 0, ::H - 1, :].reshape(2 * B, W)
    cols = output[:, 0, :, ::W - 1].swapaxes(1, 2).reshape(2 * B, H)

    # Matching domain slabs (static boundary, pre-scaled by data_norm so the
    # kernel's element path is cast + sub + square only).
    domain_f32 = domain.astype(jnp.float32)
    drows = jnp.tile(domain_f32[::H - 1, :], (B, 1))        # (2B, W)
    dcols = jnp.tile(domain_f32[:, ::W - 1].T, (B, 1))      # (2B, H)
    if data_norm != 1.0:
        drows = drows * data_norm
        dcols = dcols * data_norm

    vmem = pl.BlockSpec(memory_space=pltpu.MemorySpace.VMEM)
    smem = pl.BlockSpec(memory_space=pltpu.MemorySpace.SMEM)
    out_shape = jax.ShapeDtypeStruct((1, 1), jnp.float32)

    if H == W:
        # Square grid: all four MSE terms share the 1/(B*W) divisor, so merge
        # into a single (4B, W) measured/domain slab pair -> 2 operands, one
        # full reduction.
        x = jnp.concatenate([rows, cols], axis=0)            # (4B, W)
        d = jnp.concatenate([drows, dcols], axis=0)          # (4B, W) f32
        kernel = functools.partial(
            _merged_boundary_kernel,
            scale=weight * inv_norm2 / float(B * W),
        )
        loss = pl.pallas_call(
            kernel,
            out_shape=out_shape,
            in_specs=[vmem, vmem],
            out_specs=smem,
        )(x, d)
    else:
        kernel = functools.partial(
            _split_boundary_kernel,
            w_inv_norm2=weight * inv_norm2,
            inv_bw=1.0 / float(B * W),
            inv_bh=1.0 / float(B * H),
        )
        loss = pl.pallas_call(
            kernel,
            out_shape=out_shape,
            in_specs=[vmem, vmem, vmem, vmem],
            out_specs=smem,
        )(rows, cols, drows, dcols)
    return loss[0, 0]


def _reference_loss(output, domain, bound_weight, data_norm=1.0):
    o = output.astype(jnp.float32) / data_norm
    d = domain.astype(jnp.float32)[None]  # broadcast over batch
    mse = lambda a, b: jnp.mean((a - b) ** 2)
    loss = mse(o[:, 0, -1, :], jnp.broadcast_to(d[:, -1, :], o[:, 0, -1, :].shape))
    loss += mse(o[:, 0, :, 0], jnp.broadcast_to(d[:, :, 0], o[:, 0, :, 0].shape))
    loss += mse(o[:, 0, :, -1], jnp.broadcast_to(d[:, :, -1], o[:, 0, :, -1].shape))
    loss += mse(o[:, 0, 0, :], jnp.broadcast_to(d[:, 0, :], o[:, 0, 0, :].shape))
    return loss * bound_weight


if __name__ == "__main__":
    # Module "parameters" (deterministic, synthetic)
    bound_weight = 0.5
    xmin, xmax, ymin, ymax = 0.0, 1.0, 0.0, 1.0
    batch, channels = 2, 4
    data_norm = 2.0
    key = jax.random.PRNGKey(0)

    # --- square grid: merged 2-operand kernel path ---
    nnx, nny = 16, 16
    domain = make_domain(xmin, xmax, ymin, ymax, nnx, nny)
    output = jax.random.normal(key, (batch, channels, nnx, nny), dtype=jnp.float32)

    loss = jax.block_until_ready(
        dirichlet_boundary_loss(output, domain, bound_weight, data_norm))
    ref = _reference_loss(output, domain, bound_weight, data_norm)
    assert jnp.allclose(loss, ref, rtol=1e-5, atol=1e-6), (loss, ref)

    # native-dtype (bf16) activation path
    out_bf16 = output.astype(jnp.bfloat16)
    loss_bf16 = jax.block_until_ready(
        dirichlet_boundary_loss(out_bf16, domain, bound_weight, data_norm))
    ref_bf16 = _reference_loss(out_bf16, domain, bound_weight, data_norm)
    assert jnp.allclose(loss_bf16, ref_bf16, rtol=1e-2, atol=1e-3), (loss_bf16, ref_bf16)

    # --- rectangular grid: split 4-operand kernel path ---
    nnx2, nny2 = 16, 24
    domain2 = make_domain(xmin, xmax, ymin, ymax, nnx2, nny2)
    output2 = jax.random.normal(jax.random.PRNGKey(0),
                                (batch, channels, nnx2, nny2), dtype=jnp.float32)
    loss2 = jax.block_until_ready(
        dirichlet_boundary_loss(output2, domain2, bound_weight, data_norm))
    ref2 = _reference_loss(output2, domain2, bound_weight, data_norm)
    assert jnp.allclose(loss2, ref2, rtol=1e-5, atol=1e-6), (loss2, ref2)

    print("KERNEL_OK")
</pallas_src>

<mosaic_0001>
module attributes {stable_mosaic.version = 11 : i64} {
  func.func @_merged_boundary_kernel(%arg0: memref<8x16xf32, #tpu.memory_space<vmem>>, %arg1: memref<8x16xf32, #tpu.memory_space<vmem>>, %arg2: memref<1x1xf32, #tpu.memory_space<smem>>) attributes {dimension_semantics = [], scalar_prefetch = 0 : i64, scratch_operands = 0 : i64, tpu.core_type = #tpu.core_type<tc>} {
    %c0 = arith.constant 0 : index
    %c0_0 = arith.constant 0 : index
    %0 = vector.load %arg0[%c0, %c0_0] : memref<8x16xf32, #tpu.memory_space<vmem>>, vector<8x16xf32>
    %c0_1 = arith.constant 0 : index
    %c0_2 = arith.constant 0 : index
    %1 = vector.load %arg1[%c0_1, %c0_2] : memref<8x16xf32, #tpu.memory_space<vmem>>, vector<8x16xf32>
    %2 = arith.subf %0, %1 : vector<8x16xf32>
    %3 = arith.mulf %2, %2 : vector<8x16xf32>
    %4 = vector.shape_cast %3 : vector<8x16xf32> to vector<1x8x16xf32>
    %cst = arith.constant dense<0.000000e+00> : vector<1xf32>
    %5 = vector.multi_reduction <add>, %4, %cst [1, 2] : vector<1x8x16xf32> to vector<1xf32>
    %6 = vector.shape_cast %5 : vector<1xf32> to vector<1x1x1xf32>
    %7 = vector.extract %6[0, 0, 0] : f32 from vector<1x1x1xf32>
    %cst_3 = arith.constant 3.906250e-03 : f32
    %8 = arith.mulf %7, %cst_3 : f32
    %c0_4 = arith.constant 0 : index
    %c0_5 = arith.constant 0 : index
    %9 = memref.load %arg2[%c0_4, %c0_5] : memref<1x1xf32, #tpu.memory_space<smem>>
    memref.store %8, %arg2[%c0_4, %c0_5] : memref<1x1xf32, #tpu.memory_space<smem>>
    return
  }
}

</mosaic_0001>

<bundles_post_ra>
// kernel: tpu_custom_call.1
= control target key start
LH: loop header
LB: loop body
LE: loop exit
PB: predicated region body
PF: predicated region fallthrough
CT: control target
= control target key end

     0   :  { %7 = vsyncpa [#allocation3], 0  ;;  %s188_s0 = inlined_call_operand.hbm [shape: f32[8,16], index: 0, kind: input, shape index: {}]   ;;  %s189_s1 = inlined_call_operand.hbm [shape: f32[8,16], index: 1, kind: input, shape index: {}]   ;;  %s190_s2 = inlined_call_operand.hbm [shape: f32[1,1], index: 2, kind: output, shape index: {}]  }
   0x1   :  { %8 = vsyncpa [#allocation6], 0 }
   0x2   :  { %9 = vsyncpa [#allocation4], 0  ;;  %s134_s9 = smov [#allocation2]   ;;  %s135_s11 = smov [#allocation5]  }
   0x3   :  { %s16_s10 = sshll.u32 %s134_s9, 4  ;;  %s26_s12 = sshll.u32 %s135_s11, 4  ;;  %s17_s10 = int_to_ptr.vmem [resolvable:$true] %s16_s10  ;;  %s27_s12 = int_to_ptr.vmem [resolvable:$true] %s26_s12 }
   0x4   :  { %s74_s15 = scalar_lea.hbm %s188_s0, 128 }
   0x5   :  { %p75_p0 = scmp.ne.s32.totalorder %s188_s0, %s74_s15  ;;  %p78_p1 = scmp.lt.u32.totalorder %s74_s15, %s188_s0 }
   0x7   :  { %p80_p2 = pnand %p78_p1, %p75_p0 }
   0x9   :  { %83 = shalt.err (!%p80_p2)
}
   0xa   :  { %s84_s20 = scalar_lea.vmem %s17_s10, 128  ;;  %p89_p4 = scmp.lt.s32.totalorder %s17_s10, %s17_s10 }
   0xb   :  { %p85_p3 = scmp.ne.s32.totalorder %s17_s10, %s84_s20  ;;  %p90_p5 = scmp.lt.s32.totalorder %s84_s20, %s84_s20 }
   0xd   :  { %p91_p6 = por %p90_p5, %p89_p4 }
   0xf   :  { %p92_p7 = pnand %p91_p6, %p85_p3 }
  0x11   :  { %95 = shalt.err (!%p92_p7)
}
  0x12   :  { %19 = dma.hbm_to_vmem [thread:$0]  %s188_s0, 128, %s17_s10, [#allocation3]  }
  0x13   :  { %s96_s25 = scalar_lea.hbm %s189_s1, 128 }
  0x14   :  { %p97_p8 = scmp.ne.s32.totalorder %s189_s1, %s96_s25  ;;  %p100_p9 = scmp.lt.u32.totalorder %s96_s25, %s189_s1 }
  0x16   :  { %p102_p10 = pnand %p100_p9, %p97_p8 }
  0x18   :  { %105 = shalt.err (!%p102_p10)
}
  0x19   :  { %s106_s30 = scalar_lea.vmem %s27_s12, 128  ;;  %p111_p12 = scmp.lt.s32.totalorder %s27_s12, %s27_s12 }
  0x1a   :  { %p107_p11 = scmp.ne.s32.totalorder %s27_s12, %s106_s30  ;;  %p112_p13 = scmp.lt.s32.totalorder %s106_s30, %s106_s30 }
  0x1c   :  { %p113_p0 = por %p112_p13, %p111_p12 }
  0x1e   :  { %p114_p1 = pnand %p113_p0, %p107_p11 }
  0x20   :  { %117 = shalt.err (!%p114_p1)
}
  0x21   :  { %29 = dma.hbm_to_vmem [thread:$0]  %s189_s1, 128, %s27_s12, [#allocation6]  }
  0x22   :  { %128 = dma.done.wait [#allocation3], 128  }
  0x23   :  { %129 = vsyncadd [#allocation3], 4294967168 }
  0x24   :  { %130 = dma.done.wait [#allocation6], 128  }
  0x25   :  { %131 = vsyncadd [#allocation6], 4294967168  ;;  %v36_v0 = vld [vmem:[#allocation2] sm:$0xff]  ;;  %v37_v1 = vld [vmem:[#allocation5] sm:$0xff]  ;;  %vm40_vm0 = vcmask 130048   ;;  %s118_s7 = scalar_lea.hbm %s190_s2, 16 }
  0x26   :  { %v38_v2 = vsub.f32 %v36_v0, %v37_v1  ;;  %p119_p2 = scmp.ne.s32.totalorder %s190_s2, %s118_s7  ;;  %p122_p3 = scmp.lt.u32.totalorder %s118_s7, %s190_s2 }
  0x28   :  { %v39_v3 = vmul.f32 %v38_v2, %v38_v2  ;;  %p124_p4 = pnand %p122_p3, %p119_p2 }
  0x2a   :  { %v41_v4 = vsel %vm40_vm0, %v39_v3, 0.0 }
  0x2b   :  { %42 = vadd.xlane.f32.xlu0 %v41_v4 }
  0xb8   :  { %v43_v5 = vpop.xlane.xlu0 %42 }
  0xb9   :  { %v44_v6 = vrot.slane %v43_v5, 4 }
  0xbb   :  { %v45_v7 = vadd.f32 %v44_v6, %v43_v5 }
  0xbd   :  { %v46_v8 = vrot.slane %v45_v7, 2 }
  0xbf   :  { %v47_v9 = vadd.f32 %v46_v8, %v45_v7 }
  0xc1   :  { %v48_v10 = vrot.slane %v47_v9, 1 }
  0xc3   :  { %v49_v11 = vadd.f32 %v48_v10, %v47_v9 }
  0xc5   :  { %69 = vpush %v49_v11 }
  0xf6   :  { %s70_s1 = spop %69 }
  0xf7   :  { %s51_s4 = smul.f32 0.00390625, %s70_s1 }
  0xf9   :  { %53 = sst [smem:[#allocation7]] %s51_s4 }
  0xfa   :  { %127 = shalt.err (!%p124_p4)
}
  0xfb   :  { %s136_s12 = smov [#allocation7]  }
  0xfc   :  { %61 = dma.smem_to_hbm %s136_s12, 16, %s190_s2, [#allocation4]  }
  0xfd   :  { %132 = dma.done.wait [#allocation4], 16  }
  0xfe   :  { %133 = vsyncadd [#allocation4], 4294967280 }
  0xff   :  { %65 = sfence }
 0x100   :  { %66 = vsyncpa [#allocation3], 1 }
 0x101   :  { %67 = vsyncpa [#allocation6], 1 }
 0x102   :  { %68 = vsyncpa [#allocation4], 1 }

</bundles_post_ra>
